<compile_context>
chip_gen: v6e
topology: v6e:2x2x1
jax: 0.10.0
libtpu: 0.0.40
codegen_flags: <defaults>
</compile_context>

<pallas_src>
import math

import jax
import jax.numpy as jnp
from jax.experimental import pallas as pl
from jax.experimental.pallas import tpu as pltpu


# -----------------------------------------------------------------------------
# Kernel: full 3-layer MLP forward on one batch tile, computed in transposed
# space (features on sublanes, batch on lanes) so the width-1 output is
# lane-dense.
#
#   x_ref  : (TM, in_dim)            f32   (cast to bf16 in-kernel)
#   w1_ref : (state_dim, in_dim)     bf16  (native (out, in) layout)
#   w2_ref : (action_dim, state_dim) bf16
#   p_ref  : (rows, 4)               f32   col0=b1, col1=b2, col2=w3, [0,3]=b3
#   out_ref: (1, 1, TM)              f32
# -----------------------------------------------------------------------------
def dqn_forward_kernel(x_ref, w1_ref, w2_ref, p_ref, out_ref):
    state_dim = w1_ref.shape[0]
    action_dim = w2_ref.shape[0]

    x = x_ref[...].astype(jnp.bfloat16)            # (TM, in_dim), cast under DMA

    b1 = p_ref[0:state_dim, 0:1]                   # (state_dim, 1)
    b2 = p_ref[0:action_dim, 1:2]                  # (action_dim, 1)
    w3 = p_ref[0:action_dim, 2:3]                  # (action_dim, 1)
    b3 = p_ref[0:1, 3:4]                           # (1, 1)

    # fc1 + ReLU: NT contraction (same pattern as flash-attention q@k^T) puts
    # the batch dimension on lanes.  bf16 operands, f32 accumulation.
    h1 = jnp.einsum("oi,bi->ob", w1_ref[...], x,
                    preferred_element_type=jnp.float32)        # (state_dim, TM)
    h1 = jnp.maximum(h1 + b1, 0.0)

    # fc2 + ReLU: standard matmul, batch stays lane-dense.
    h2 = jnp.dot(w2_ref[...], h1.astype(jnp.bfloat16),
                 preferred_element_type=jnp.float32)           # (action_dim, TM)
    h2 = jnp.maximum(h2 + b2, 0.0)

    # fc3: output width 1 -> VPU multiply + sublane reduction (cheaper than a
    # tiny MXU pass); result is already a lane-dense (1, TM) row, all f32.
    q = jnp.sum(h2 * w3, axis=0, keepdims=True) + b3           # (1, TM)

    out_ref[...] = q[None].astype(out_ref.dtype)               # (1, 1, TM)


# -----------------------------------------------------------------------------
# One-time parameter repack (out of the hot path): cast MXU operands to bf16
# (keeping the native (out, in) orientation), pack biases + fc3 weight column
# into a single f32 slab.
# -----------------------------------------------------------------------------
def prepare_params(params):
    state_dim, in_dim = params["w1"].shape
    action_dim = params["w2"].shape[0]
    rows = max(state_dim, action_dim, 1)

    slab = jnp.zeros((rows, 4), jnp.float32)
    slab = slab.at[:state_dim, 0].set(params["b1"].astype(jnp.float32))
    slab = slab.at[:action_dim, 1].set(params["b2"].astype(jnp.float32))
    slab = slab.at[:action_dim, 2].set(params["w3"].reshape(-1).astype(jnp.float32))
    slab = slab.at[0, 3].set(params["b3"].reshape(()).astype(jnp.float32))

    return {
        "w1": params["w1"].astype(jnp.bfloat16),     # (state_dim, in_dim)
        "w2": params["w2"].astype(jnp.bfloat16),     # (action_dim, state_dim)
        "slab": slab,
        "state_dim": state_dim, "action_dim": action_dim, "in_dim": in_dim,
    }


# -----------------------------------------------------------------------------
# Wrapper: batch-gridded pallas_call with a lane-dense output layout.
# -----------------------------------------------------------------------------
def dqn_forward(x, prep, *, tm_max=8192):
    """x: [batch, state_dim + action_dim] f32.  Returns [batch, 1] f32."""
    B, in_dim = x.shape
    assert in_dim == prep["in_dim"]
    state_dim = prep["state_dim"]
    action_dim = prep["action_dim"]
    slab_shape = prep["slab"].shape

    # Batch tile: multiple of 8 sublanes, as large as sensible (the kernel is
    # otherwise per-grid-step-overhead-bound).  No padding of x: the last
    # block may be partial; its rows are independent and discarded below.
    tm_max = max(8, (tm_max // 8) * 8)
    tm = min(tm_max, ((B + 7) // 8) * 8)
    num_tiles = pl.cdiv(B, tm)

    out = pl.pallas_call(
        dqn_forward_kernel,
        out_shape=jax.ShapeDtypeStruct((num_tiles, 1, tm), jnp.float32),
        grid=(num_tiles,),
        in_specs=[
            pl.BlockSpec((tm, in_dim), lambda i: (i, 0)),              # x tile (f32)
            pl.BlockSpec((state_dim, in_dim), lambda i: (0, 0)),       # w1 (resident)
            pl.BlockSpec((action_dim, state_dim), lambda i: (0, 0)),   # w2 (resident)
            pl.BlockSpec(slab_shape, lambda i: (0, 0)),                # bias/w3 slab
        ],
        out_specs=pl.BlockSpec((1, 1, tm), lambda i: (i, 0, 0)),       # lane-dense q
        compiler_params=pltpu.CompilerParams(
            dimension_semantics=("parallel",),
            vmem_limit_bytes=32 * 1024 * 1024,
        ),
    )(x, prep["w1"], prep["w2"], prep["slab"])

    # (num_tiles, 1, tm) flattens in batch order; drop padded tail entries.
    return out.reshape(-1)[:B].reshape(B, 1)


# -----------------------------------------------------------------------------
# Init + reference (reference applies the same bf16 quantization of MXU
# operands so the correctness check stays tight).
# -----------------------------------------------------------------------------
def init_params(key, state_dim, action_dim):
    def linear(key, in_f, out_f):
        kw, kb = jax.random.split(key)
        bound = 1.0 / math.sqrt(in_f)
        w = jax.random.uniform(kw, (out_f, in_f), jnp.float32, -bound, bound)
        b = jax.random.uniform(kb, (out_f,), jnp.float32, -bound, bound)
        return w, b

    k1, k2, k3 = jax.random.split(key, 3)
    w1, b1 = linear(k1, state_dim + action_dim, state_dim)
    w2, b2 = linear(k2, state_dim, action_dim)
    w3, b3 = linear(k3, action_dim, 1)
    return {"w1": w1, "b1": b1, "w2": w2, "b2": b2, "w3": w3, "b3": b3}


def reference_forward(x, params):
    bf = lambda a: a.astype(jnp.bfloat16).astype(jnp.float32)
    h1 = jnp.maximum(bf(x) @ bf(params["w1"]).T + params["b1"], 0.0)
    h2 = jnp.maximum(bf(h1) @ bf(params["w2"]).T + params["b2"], 0.0)
    q = jnp.sum(h2 * params["w3"].reshape(1, -1), axis=-1, keepdims=True)
    return q + params["b3"]


if __name__ == "__main__":
    state_dim = 32
    action_dim = 16

    key = jax.random.PRNGKey(0)
    kx1, kx2, kp = jax.random.split(key, 3)

    params = init_params(kp, state_dim, action_dim)
    prep = prepare_params(params)          # one-time repack (not per call)

    # Case 1: small aligned batch, single grid step, default (large) tile cap.
    x1 = jax.random.normal(kx1, (8, state_dim + action_dim), jnp.float32)
    out1 = jax.block_until_ready(dqn_forward(x1, prep))
    ref1 = reference_forward(x1, params)
    assert out1.shape == (8, 1), out1.shape
    assert jnp.allclose(out1, ref1, atol=2e-3, rtol=2e-3), "case 1 mismatch"

    # Case 2: multi-step grid with a partial last tile (40 rows, tm=16, grid=3).
    x2 = jax.random.normal(kx2, (40, state_dim + action_dim), jnp.float32)
    out2 = jax.block_until_ready(dqn_forward(x2, prep, tm_max=16))
    ref2 = reference_forward(x2, params)
    assert out2.shape == (40, 1), out2.shape
    assert jnp.allclose(out2, ref2, atol=2e-3, rtol=2e-3), "case 2 mismatch"

    print("KERNEL_OK")
</pallas_src>

<mosaic_0001>
module attributes {stable_mosaic.version = 11 : i64} {
  func.func @dqn_forward_kernel(%arg0: i32, %arg1: memref<8x48xf32, #tpu.memory_space<vmem>>, %arg2: memref<32x48xbf16, #tpu.memory_space<vmem>>, %arg3: memref<16x32xbf16, #tpu.memory_space<vmem>>, %arg4: memref<32x4xf32, #tpu.memory_space<vmem>>, %arg5: memref<1x1x8xf32, #tpu.memory_space<vmem>>) attributes {dimension_semantics = [#tpu.dimension_semantics<parallel>], iteration_bounds = array<i64: 1>, scalar_prefetch = 0 : i64, scratch_operands = 0 : i64, tpu.core_type = #tpu.core_type<tc>, window_params = [{transform_indices = @transform_0, window_bounds = array<i64: 8, 48>}, {pipeline_mode = #tpu.pipeline_mode<synchronous>, transform_indices = @transform_1, window_bounds = array<i64: 32, 48>}, {pipeline_mode = #tpu.pipeline_mode<synchronous>, transform_indices = @transform_2, window_bounds = array<i64: 16, 32>}, {pipeline_mode = #tpu.pipeline_mode<synchronous>, transform_indices = @transform_3, window_bounds = array<i64: 32, 4>}, {transform_indices = @transform_4, window_bounds = array<i64: 1, 1, 8>}]} {
    %c0 = arith.constant 0 : index
    %c0_0 = arith.constant 0 : index
    %0 = vector.load %arg1[%c0, %c0_0] : memref<8x48xf32, #tpu.memory_space<vmem>>, vector<8x48xf32>
    %1 = arith.truncf %0 : vector<8x48xf32> to vector<8x48xbf16>
    %c0_1 = arith.constant 0 : index
    %c0_2 = arith.constant 0 : index
    %2 = vector.load %arg4[%c0_1, %c0_2] : memref<32x4xf32, #tpu.memory_space<vmem>>, vector<32x1xf32>
    %c0_3 = arith.constant 0 : index
    %c1 = arith.constant 1 : index
    %3 = vector.load %arg4[%c0_3, %c1] : memref<32x4xf32, #tpu.memory_space<vmem>>, vector<16x1xf32>
    %c0_4 = arith.constant 0 : index
    %c2 = arith.constant 2 : index
    %4 = vector.load %arg4[%c0_4, %c2] : memref<32x4xf32, #tpu.memory_space<vmem>>, vector<16x1xf32>
    %c0_5 = arith.constant 0 : index
    %c3 = arith.constant 3 : index
    %5 = vector.load %arg4[%c0_5, %c3] : memref<32x4xf32, #tpu.memory_space<vmem>>, vector<1x1xf32>
    %c0_6 = arith.constant 0 : index
    %c0_7 = arith.constant 0 : index
    %6 = vector.load %arg2[%c0_6, %c0_7] : memref<32x48xbf16, #tpu.memory_space<vmem>>, vector<32x48xbf16>
    "tpu.trace_start"() <{level = 10 : i32, message = "oi,bi->ob"}> : () -> ()
    %cst = arith.constant dense<0.000000e+00> : vector<32x8xf32>
    %7 = tpu.matmul %6, %1, %cst {dimension_numbers = #tpu.dot_dimension_numbers<[1], [1], [0], [0], [0, 0, 1, 0], [], []>} : vector<32x48xbf16>, vector<8x48xbf16>, vector<32x8xf32> -> vector<32x8xf32>
    "tpu.trace_stop"() : () -> ()
    %8 = vector.broadcast %2 : vector<32x1xf32> to vector<32x8xf32>
    %9 = arith.addf %7, %8 : vector<32x8xf32>
    %cst_8 = arith.constant 0.000000e+00 : f32
    %10 = vector.broadcast %cst_8 : f32 to vector<32x8xf32>
    %11 = arith.maximumf %9, %10 : vector<32x8xf32>
    %c0_9 = arith.constant 0 : index
    %c0_10 = arith.constant 0 : index
    %12 = vector.load %arg3[%c0_9, %c0_10] : memref<16x32xbf16, #tpu.memory_space<vmem>>, vector<16x32xbf16>
    %13 = arith.truncf %11 : vector<32x8xf32> to vector<32x8xbf16>
    %cst_11 = arith.constant dense<0.000000e+00> : vector<16x8xf32>
    %14 = tpu.matmul %12, %13, %cst_11 {dimension_numbers = #tpu.dot_dimension_numbers<[1], [0], [0], [1], [0, 0, 1, 1], [], []>} : vector<16x32xbf16>, vector<32x8xbf16>, vector<16x8xf32> -> vector<16x8xf32>
    %15 = vector.broadcast %3 : vector<16x1xf32> to vector<16x8xf32>
    %16 = arith.addf %14, %15 : vector<16x8xf32>
    %cst_12 = arith.constant 0.000000e+00 : f32
    %17 = vector.broadcast %cst_12 : f32 to vector<16x8xf32>
    %18 = arith.maximumf %16, %17 : vector<16x8xf32>
    %19 = vector.broadcast %4 : vector<16x1xf32> to vector<16x8xf32>
    %20 = arith.mulf %18, %19 : vector<16x8xf32>
    %cst_13 = arith.constant dense<0.000000e+00> : vector<8xf32>
    %21 = vector.multi_reduction <add>, %20, %cst_13 [0] : vector<16x8xf32> to vector<8xf32>
    %22 = vector.shape_cast %21 : vector<8xf32> to vector<1x8xf32>
    %23 = vector.broadcast %5 : vector<1x1xf32> to vector<1x8xf32>
    %24 = arith.addf %22, %23 : vector<1x8xf32>
    %25 = vector.shape_cast %24 : vector<1x8xf32> to vector<1x1x8xf32>
    %c0_14 = arith.constant 0 : index
    %c0_15 = arith.constant 0 : index
    %c0_16 = arith.constant 0 : index
    %26 = vector.load %arg5[%c0_14, %c0_15, %c0_16] : memref<1x1x8xf32, #tpu.memory_space<vmem>>, vector<1x1x8xf32>
    tpu.vector_store %arg5[%c0_14, %c0_15, %c0_16], %25 {strides = array<i32>} : memref<1x1x8xf32, #tpu.memory_space<vmem>>, vector<1x1x8xf32>,
    return
  }
  func.func @transform_0(%arg0: i32) -> (i32, i32) {
    %c0_i32 = arith.constant 0 : i32
    %c0_i32_0 = arith.constant 0 : i32
    return %arg0, %c0_i32 : i32, i32
  }
  func.func @transform_1(%arg0: i32) -> (i32, i32) {
    %c0_i32 = arith.constant 0 : i32
    %c0_i32_0 = arith.constant 0 : i32
    %c0_i32_1 = arith.constant 0 : i32
    return %c0_i32, %c0_i32_0 : i32, i32
  }
  func.func @transform_2(%arg0: i32) -> (i32, i32) {
    %c0_i32 = arith.constant 0 : i32
    %c0_i32_0 = arith.constant 0 : i32
    %c0_i32_1 = arith.constant 0 : i32
    return %c0_i32, %c0_i32_0 : i32, i32
  }
  func.func @transform_3(%arg0: i32) -> (i32, i32) {
    %c0_i32 = arith.constant 0 : i32
    %c0_i32_0 = arith.constant 0 : i32
    %c0_i32_1 = arith.constant 0 : i32
    return %c0_i32, %c0_i32_0 : i32, i32
  }
  func.func @transform_4(%arg0: i32) -> (i32, i32, i32) {
    %c0_i32 = arith.constant 0 : i32
    %c0_i32_0 = arith.constant 0 : i32
    %c0_i32_1 = arith.constant 0 : i32
    return %arg0, %c0_i32, %c0_i32_0 : i32, i32, i32
  }
}

</mosaic_0001>

<bundles_post_ra>
// kernel: tpu_custom_call.1
= control target key start
LH: loop header
LB: loop body
LE: loop exit
PB: predicated region body
PF: predicated region fallthrough
CT: control target
= control target key end

     0   :  { %vm60_vm0 = vcmask 392192   ;;  %v296_v3 = vmov 0   ;;  %s362_s0 = inlined_call_operand.vmem [shape: f32[8,48], index: 0, kind: input, shape index: {}]   ;;  %s363_s1 = inlined_call_operand.vmem [shape: bf16[32,48], index: 1, kind: input, shape index: {}]   ;;  %s364_s2 = inlined_call_operand.vmem [shape: bf16[16,32], index: 2, kind: input, shape index: {}]   ;;  %s365_s3 = inlined_call_operand.vmem [shape: f32[32,4], index: 3, kind: input, shape index: {}]   ;;  %s366_s4 = inlined_call_operand.hbm [shape: f32[1,1,8], index: 4, kind: output, shape index: {}]  }
   0x1   :  { %v19_v0 = vld [vmem:[%s362_s0] sm:$0xff]  ;;  %263 = vset.pattern.permute.xlu0 %v296_v3  ;;  %v23_v4 = vld [vmem:[%s365_s3 + $0x10] sm:$0xff]  ;;  %264 = vset.pattern.permute.xlu1 %v296_v3 }
   0x2   :  { %v20_v1 = vpack.c.bf16 %v19_v0, %v19_v0  ;;  %v271_v2 = vld [vmem:[%s363_s1] sm:$0xff]   ;;  %42 = vperm.xlu0 %263, %v23_v4  }
   0x3   :  { %243 = vmatprep.mubr.msk.bf16.mxu0 %vm60_vm0, %v271_v2  ;;  %v21_v6 = vld [vmem:[%s365_s3] sm:$0xff] }
   0x4   :  { %255 = vmatprep.subr.msk.bf16.mxu0 %vm60_vm0, %v20_v1  ;;  %v68_v5 = vsel %vm60_vm0, %v20_v1, 0 }
   0x5   :  { %242 = vmatpush3.bf16.xpose.msra.mxu0 %v68_v5 }
   0x6   :  { %9 = vsyncpa [#allocation3], 0  ;;  %v24_v7 = vld [vmem:[%s365_s3 + $0x18] sm:$0xff]  ;;  %32 = vperm.xlu1 %264, %v21_v6   ;;  %v22_v8 = vld [vmem:[%s365_s3 + $0x8] sm:$0xff]  ;;  %v297_v10 = vmov 0.0   ;;  %vm298_vm1 = vmmov 0  }
   0x7   :  { %v272_v9 = vld [vmem:[%s363_s1 + $0x8] sm:$0xff]   ;;  %47 = vperm.xlu0 %263, %v24_v7   ;;  %247 = vmatprep.subr.bf16.mxu1 %v297_v10  ;;  %v299_v11 = vmov 1   ;;  %v300_v12 = vmov 2   ;;  %v25_v13 = vld [vmem:[%s365_s3] sm:$0x1]  ;;  %v301_v14 = vmov 3  }
   0x8   :  { %251 = vmatprep.mubr.msk.bf16.mxu1 %vm298_vm1, %v297_v10  ;;  %v273_v33 = vld [vmem:[%s364_s2] sm:$0xff]   ;;  %vm140_vm2 = vcmask 261120   ;;  %vm197_vm3 = vcmask 64512   ;;  %s302_s2 = smov [#allocation2]   ;;  %vm213_vm4 = vcmask 57344  }
   0x9   :  { %s221_s30 = sshll.u32 %s302_s2, 4  ;;  %s222_s30 = int_to_ptr.vmem [resolvable:$true] %s221_s30 }
   0xa   :  { %37 = vperm.xlu1 %264, %v22_v8   ;;  %s274_s5 = scalar_lea.vmem %s222_s30, 16  ;;  %s278_s6 = scalar_lea.vmem %s222_s30, 32 }
   0xb   :  { %265 = vset.pattern.permute.xlu0 %v299_v11  ;;  %p275_p0 = scmp.ne.s32.totalorder %s222_s30, %s274_s5  ;;  %p279_p1 = scmp.lt.s32.totalorder %s222_s30, %s222_s30 }
   0xc   :  { %244 = vmatmul.mubr.msk.bf16.vlgmr.msra.gmra.mxu0 %vm60_vm0, %v272_v9  ;;  %128 = vperm.xlu0 %265, %v21_v6   ;;  %p280_p2 = scmp.lt.s32.totalorder %s278_s6, %s274_s5 }
   0xe   :  { %266 = vset.pattern.permute.xlu1 %v299_v11  ;;  %p281_p3 = por %p280_p2, %p279_p1 }
   0xf   :  { %132 = vperm.xlu1 %266, %v22_v8  }
  0x10   :  { %268 = vset.pattern.permute.xlu0 %v300_v12  ;;  %p282_p4 = pnand %p281_p3, %p275_p0 }
  0x11   :  { %192 = vperm.xlu0 %268, %v22_v8  }
  0x13   :  { %267 = vset.pattern.permute.xlu1 %v300_v12 }
  0x14   :  { %188 = vperm.xlu1 %267, %v21_v6  }
  0x15   :  { %270 = vset.pattern.permute.xlu0 %v301_v14 }
  0x18   :  { %269 = vset.pattern.permute.xlu1 %v301_v14 }
  0x19   :  { %209 = vperm.xlu1 %269, %v25_v13  }
  0x7d   :  { %v43_v15 = vpop.permute.xlu0 %42 }
  0x81   :  { %v33_v16 = vpop.permute.xlu1 %32 }
  0x82   :  { %v48_v20 = vpop.permute.xlu0 %47 }
  0x85   :  { %v38_v23 = vpop.permute.xlu1 %37 }
  0x87   :  { %v129_v34 = vpop.permute.xlu0 %128 }
  0x8a   :  { %v133_v35 = vpop.permute.xlu1 %132 }
  0x8c   :  { %v193_v44 = vpop.permute.xlu0 %192 }
  0x8f   :  { %v189_v40 = vpop.permute.xlu1 %188 }
  0x94   :  { %v210_v56 = vpop.permute.xlu1 %209 }
  0xcc   :  { %v245_v17 = vpop.f32.mrf.mxu0 }
  0xcd   :  { %v113_v19 = vadd.f32 %v245_v17, %v43_v15 }
  0xce   :  { %v104_v18 = vpop.f32.mrf.mxu0 }
  0xcf   :  { %v121_v25 = vmax.f32 %v113_v19, 0.0  ;;  %v105_v26 = vadd.f32 %v104_v18, %v33_v16 }
  0xd0   :  { %v246_v21 = vpop.f32.mrf.mxu0 }
  0xd1   :  { %v116_v22 = vadd.f32 %v246_v21, %v48_v20  ;;  %v119_v31 = vmax.f32 %v105_v26, 0.0 }
  0xd2   :  { %v107_v24 = vpop.f32.mrf.mxu0 }
  0xd3   :  { %v122_v27 = vmax.f32 %v116_v22, 0.0  ;;  %v108_v28 = vadd.f32 %v107_v24, %v38_v23 }
  0xd5   :  { %v120_v29 = vmax.f32 %v108_v28, 0.0  ;;  %v126_v30 = vpack.c.bf16 %v122_v27, %v121_v25 }
  0xd7   :  { %248 = vmatpush3.bf16.msra.mxu1 %v126_v30  ;;  %v125_v32 = vpack.c.bf16 %v120_v29, %v119_v31 }
  0xd8   :  { %249 = vmatprep.subr.bf16.mxu1 %v297_v10 }
  0xdb   :  { %250 = vmatpush3.bf16.msra.mxu1 %v125_v32 }
  0xde   :  { %252 = vmatmul.mubr.msk.bf16.vlgmr.msra.gmra.mxu1 %vm140_vm2, %v273_v33 }
 0x19e   :  { %v178_v36 = vpop.f32.mrf.mxu1 }
 0x19f   :  { %v179_v37 = vadd.f32 %v178_v36, %v129_v34 }
 0x1a0   :  { %v253_v38 = vpop.f32.mrf.mxu1 }
 0x1a1   :  { %v185_v39 = vmax.f32 %v179_v37, 0.0 }
 0x1a2   :  { %v181_v41 = vpop.f32.mrf.mxu1 }
 0x1a3   :  { %v182_v42 = vadd.f32 %v181_v41, %v133_v35  ;;  %v195_v45 = vmul.f32 %v189_v40, %v185_v39 }
 0x1a4   :  { %v254_v43 = vpop.f32.mrf.mxu1 }
 0x1a5   :  { %v186_v46 = vmax.f32 %v182_v42, 0.0  ;;  %v198_v48 = vsel %vm197_vm3, %v195_v45, 0.0 }
 0x1a7   :  { %v196_v47 = vmul.f32 %v193_v44, %v186_v46 }
 0x1a9   :  { %v199_v49 = vsel %vm197_vm3, %v196_v47, 0.0 }
 0x1aa   :  { %v200_v50 = vadd.f32 %v199_v49, %v198_v48 }
 0x1ac   :  { %v201_v51 = vrot.slane %v200_v50, 4 }
 0x1ae   :  { %v202_v52 = vadd.f32 %v201_v51, %v200_v50 }
 0x1b0   :  { %v203_v53 = vrot.slane %v202_v52, 2 }
 0x1b2   :  { %v204_v54 = vadd.f32 %v203_v53, %v202_v52 }
 0x1b4   :  { %v205_v55 = vrot.slane %v204_v54, 1 }
 0x1b6   :  { %v206_v57 = vadd.f32 %v205_v55, %v204_v54 }
 0x1b8   :  { %v212_v58 = vadd.f32 %v210_v56, %v206_v57 }
 0x1ba   :  { %214 = vst.msk [vmem:[#allocation2] sm:$0x1] %vm213_vm4, %v212_v58 }
 0x1bb   :  { %285 = shalt.err (!%p282_p4)
}
 0x1bc   :  { %224 = dma.vmem_to_hbm [thread:$0]  %s222_s30, 16, %s366_s4, [#allocation3]  }
 0x1bd   :  { %294 = dma.done.wait [#allocation3], 16  }
 0x1be   :  { %295 = vsyncadd [#allocation3], 4294967280 }
 0x1bf   :  { %228 = vsyncpa [#allocation3], 1 }

</bundles_post_ra>
